<compile_context>
chip_gen: v7x
topology: tpu7x:2x2x1
jax: 0.10.0
libtpu: 0.0.40
codegen_flags: <defaults>
</compile_context>

<pallas_src>
import jax
import jax.numpy as jnp
from jax import lax
from jax.experimental import pallas as pl
from jax.experimental.pallas import tpu as pltpu

_LANES = 128
_MAX_K_COLLAPSE = 2048   # collapse the K grid axis when K (padded) fits one block


def _ru(x, m):
    return ((x + m - 1) // m) * m


def _pad2(x, rows, cols):
    pr, pc = rows - x.shape[0], cols - x.shape[1]
    if pr == 0 and pc == 0:
        return x
    return jnp.pad(x, ((0, pr), (0, pc)))


def _pick_tm(m):
    """Largest M tile (multiple of 128, <=512) that divides padded M while
    keeping >=2 M blocks (v7x has two TensorCores; don't collapse the
    parallel axis).  128 floor keeps v5e's 128x128 MXU mapping 1:1."""
    mp = _ru(m, 128)
    if mp <= 128:
        return 128
    for t in (512, 384, 256, 128):
        if t <= mp // 2 and mp % t == 0:
            return t
    return 128


# ---------------------------------------------------------------------------
# Tiled MXU matmul:  C = op(a) @ op(b) (+ bias) (optionally ReLU)
#   op(x) = x.T when the corresponding trans_* flag is set (handled via
#   dot_general contraction dims -- no transposes materialized anywhere).
# bf16 operands, f32 accumulation, lane-dense (128-padded) output.
# ---------------------------------------------------------------------------
def _tiled_matmul(a, b, bias=None, apply_relu=False,
                  trans_a=False, trans_b=False, out_dtype=jnp.float32):
    if trans_a:
        K, M = a.shape
    else:
        M, K = a.shape
    if trans_b:
        N, Kb = b.shape
    else:
        Kb, N = b.shape
    assert K == Kb

    tm = _pick_tm(M)
    tn = _LANES
    kp128 = _ru(K, _LANES)
    collapse_k = kp128 <= _MAX_K_COLLAPSE
    tk = kp128 if collapse_k else _LANES
    Mp, Np, Kp = _ru(M, tm), _ru(N, tn), _ru(K, tk)

    # Cast to bf16 BEFORE padding (no padded-f32 intermediate in HBM).
    if trans_a:                               # a is (K, M); lhs contracts dim 0
        a_p = _pad2(a.astype(jnp.bfloat16), Kp, Mp)
        a_block, lhs_cdim = (tk, tm), 0
        a_map = (lambda i, j: (0, i)) if collapse_k else (lambda i, j, k: (k, i))
    else:                                     # a is (M, K); lhs contracts dim 1
        a_p = _pad2(a.astype(jnp.bfloat16), Mp, Kp)
        a_block, lhs_cdim = (tm, tk), 1
        a_map = (lambda i, j: (i, 0)) if collapse_k else (lambda i, j, k: (i, k))
    if trans_b:                               # b is (N, K); rhs contracts dim 1
        b_p = _pad2(b.astype(jnp.bfloat16), Np, Kp)
        b_block, rhs_cdim = (tn, tk), 1
        b_map = (lambda i, j: (j, 0)) if collapse_k else (lambda i, j, k: (j, k))
    else:                                     # b is (K, N); rhs contracts dim 0
        b_p = _pad2(b.astype(jnp.bfloat16), Kp, Np)
        b_block, rhs_cdim = (tk, tn), 0
        b_map = (lambda i, j: (0, j)) if collapse_k else (lambda i, j, k: (k, j))
    dn = (((lhs_cdim,), (rhs_cdim,)), ((), ()))

    have_bias = bias is not None
    operands = [a_p, b_p]
    in_specs = [pl.BlockSpec(a_block, a_map), pl.BlockSpec(b_block, b_map)]
    if have_bias:
        bias_p = _pad2(bias.astype(jnp.float32).reshape(1, N), 1, Np)
        bias_map = (lambda i, j: (0, j)) if collapse_k else (lambda i, j, k: (0, j))
        operands.append(bias_p)
        in_specs.append(pl.BlockSpec((1, tn), bias_map))

    # True (unpadded) cost -- padded numbers overstate by up to ~70x here.
    cost = pl.CostEstimate(
        flops=2 * M * N * K, transcendentals=0,
        bytes_accessed=(a.size + b.size) * 2 + M * N * jnp.dtype(out_dtype).itemsize)

    if collapse_k:
        # Single K block: no accumulator scratch, no pl.when, one fused step.
        def kernel(*refs):
            if have_bias:
                a_ref, b_ref, bias_ref, o_ref = refs
            else:
                a_ref, b_ref, o_ref = refs
            r = lax.dot_general(a_ref[...], b_ref[...], dimension_numbers=dn,
                                preferred_element_type=jnp.float32)
            if have_bias:
                r = r + bias_ref[...]
            if apply_relu:
                r = jnp.maximum(r, 0.0)
            o_ref[...] = r.astype(o_ref.dtype)

        out = pl.pallas_call(
            kernel,
            out_shape=jax.ShapeDtypeStruct((Mp, Np), out_dtype),
            grid=(Mp // tm, Np // tn),
            in_specs=in_specs,
            out_specs=pl.BlockSpec((tm, tn), lambda i, j: (i, j)),
            compiler_params=pltpu.CompilerParams(
                dimension_semantics=("parallel", "parallel")),
            cost_estimate=cost,
        )(*operands)
        return out[:M, :N].astype(out_dtype)

    # General path (large K): keep the K grid axis but accumulate straight
    # into the resident f32 output block -- no separate VMEM acc scratch.
    def kernel(*refs):
        if have_bias:
            a_ref, b_ref, bias_ref, o_ref = refs
        else:
            a_ref, b_ref, o_ref = refs

        @pl.when(pl.program_id(2) == 0)
        def _init():
            o_ref[...] = jnp.zeros_like(o_ref)

        o_ref[...] += lax.dot_general(a_ref[...], b_ref[...],
                                      dimension_numbers=dn,
                                      preferred_element_type=jnp.float32)

        @pl.when(pl.program_id(2) == pl.num_programs(2) - 1)
        def _fin():
            r = o_ref[...]
            if have_bias:
                r = r + bias_ref[...]
            if apply_relu:
                r = jnp.maximum(r, 0.0)
            o_ref[...] = r

    out = pl.pallas_call(
        kernel,
        out_shape=jax.ShapeDtypeStruct((Mp, Np), jnp.float32),
        grid=(Mp // tm, Np // tn, Kp // tk),
        in_specs=in_specs,
        out_specs=pl.BlockSpec((tm, tn), lambda i, j, k: (i, j)),
        compiler_params=pltpu.CompilerParams(
            dimension_semantics=("parallel", "parallel", "arbitrary")),
        cost_estimate=cost,
    )(*operands)
    return out[:M, :N].astype(out_dtype)


# ---------------------------------------------------------------------------
# conv matmul (+ bias + ReLU) with a custom VJP so jax.grad reuses the same
# Pallas kernel for the backward matmuls without materializing transposes.
# Forward output is bf16 (only consumed as bf16 patches / >0 mask).
# ---------------------------------------------------------------------------
@jax.custom_vjp
def conv_matmul_bias_relu(patches, wmat, bias):
    return _tiled_matmul(patches, wmat, bias=bias, apply_relu=True,
                         out_dtype=jnp.bfloat16)


def _cmbr_fwd(patches, wmat, bias):
    y = _tiled_matmul(patches, wmat, bias=bias, apply_relu=True,
                      out_dtype=jnp.bfloat16)
    return y, (patches, wmat, y)


def _cmbr_bwd(res, g):
    patches, wmat, y = res
    # ReLU-masked cotangent, computed once, kept bf16 so both backward matmuls
    # DMA it at half width.
    # TODO(synk): fuse the (y > 0) mask into the backward matmul kernels as an
    # extra operand to skip this elementwise HBM round trip entirely.
    dz = (g * (y > 0).astype(g.dtype)).astype(jnp.bfloat16)
    dpatches = _tiled_matmul(dz, wmat, trans_b=True, out_dtype=patches.dtype)
    dwmat = _tiled_matmul(patches, dz, trans_a=True, out_dtype=wmat.dtype)
    dbias = jnp.sum(dz.astype(jnp.float32), axis=0)
    return dpatches, dwmat, dbias


conv_matmul_bias_relu.defvjp(_cmbr_fwd, _cmbr_bwd)


# ---------------------------------------------------------------------------
# Synthetic "net": conv3x3 -> ReLU -> conv3x3 -> ReLU -> GAP -> linear.
# NHWC internally; im2col + Pallas MXU matmul with fused bias+ReLU.
# ---------------------------------------------------------------------------
def conv2d_relu(x_nhwc, w, b):
    cout, cin, kh, kw = w.shape
    B, H, W, C = x_nhwc.shape
    assert C == cin
    Ho, Wo = H - kh + 1, W - kw + 1
    cols = [x_nhwc[:, i:i + Ho, j:j + Wo, :]
            for i in range(kh) for j in range(kw)]                 # (B,Ho,Wo,Cin)
    patches = jnp.concatenate(cols, axis=-1).reshape(B * Ho * Wo, kh * kw * cin)
    wmat = w.transpose(2, 3, 1, 0).reshape(kh * kw * cin, cout)    # tiny weight
    y = conv_matmul_bias_relu(patches, wmat, b)                    # bf16
    return y.reshape(B, Ho, Wo, cout)                              # stays NHWC


def net_forward(params, x_nchw):
    x = jnp.transpose(x_nchw, (0, 2, 3, 1))          # NCHW -> NHWC once at entry
    h = conv2d_relu(x, params["conv1_w"], params["conv1_b"])
    h = conv2d_relu(h, params["conv2_w"], params["conv2_b"])
    h = jnp.mean(h.astype(jnp.float32), axis=(1, 2))  # GAP, upcast tiny path
    # FC is (B,16) @ (16,10): Pallas launch overhead dwarfs the FLOPs -> jnp.
    logits = h @ params["fc_w"].T + params["fc_b"][None, :]
    return logits


def cross_entropy(logits, targets):
    logp = jax.nn.log_softmax(logits, axis=-1)
    return -jnp.mean(jnp.take_along_axis(logp, targets[:, None], axis=-1)[:, 0])


# ---------------------------------------------------------------------------
# Fused saliency epilogue: per-filter abs-mean of all 4-D grads + concat +
# std/norm standardization in ONE Pallas call.  Filters sit on the lane axis
# (columns) so the reduce is a sublane reduce and the store is one lane-dense
# (1, 128) write.
# ---------------------------------------------------------------------------
def _saliency_kernel(mode):
    def kernel(g_ref, invc_ref, mean_ref, std_ref, o_ref):
        naive = jnp.sum(jnp.abs(g_ref[...]), axis=0, keepdims=True) * invc_ref[...]
        if mode == "naive":
            o_ref[...] = naive
        elif mode == "std":
            std = jnp.where(std_ref[...] <= 1e-14, 1.0, std_ref[...])  # torch clamp
            o_ref[...] = (naive - mean_ref[...]) / std
        else:  # norm
            mean = jnp.where(mean_ref[...] <= 1e-14, 1.0, mean_ref[...])
            o_ref[...] = naive / mean
    return kernel


def saliency_epilogue(conv_grads, mean, std, mode):
    n_filters = sum(int(g.shape[0]) for g in conv_grads)
    max_k = max(int(g.size) // int(g.shape[0]) for g in conv_grads)
    assert n_filters <= _LANES, "synthetic-net scale only"
    kp = _ru(max_k, 8)

    # TODO(synk): plumb the (K, Cout)-layout dwmat cotangents straight out of
    # the conv VJP instead of re-transposing the (tiny) param-shaped grads.
    cols, inv_counts = [], []
    for g in conv_grads:
        cout = int(g.shape[0])
        k = int(g.size) // cout
        gt = g.reshape(cout, k).T.astype(jnp.float32)         # (k, cout)
        cols.append(jnp.pad(gt, ((0, kp - k), (0, 0))))
        inv_counts.append(jnp.full((cout,), 1.0 / k, jnp.float32))

    gmat = _pad2(jnp.concatenate(cols, axis=1), kp, _LANES)
    invc = _pad2(jnp.concatenate(inv_counts).reshape(1, -1), 1, _LANES)
    mean = jnp.zeros((n_filters,), jnp.float32) if mean is None else mean
    std = jnp.ones((n_filters,), jnp.float32) if std is None else std
    mean_p = _pad2(mean.astype(jnp.float32).reshape(1, -1), 1, _LANES)
    std_p = _pad2(std.astype(jnp.float32).reshape(1, -1), 1, _LANES)

    out = pl.pallas_call(
        _saliency_kernel(mode),
        out_shape=jax.ShapeDtypeStruct((1, _LANES), jnp.float32),
        grid=(1,),
        in_specs=[pl.BlockSpec((kp, _LANES), lambda i: (0, 0)),
                  pl.BlockSpec((1, _LANES), lambda i: (0, 0)),
                  pl.BlockSpec((1, _LANES), lambda i: (0, 0)),
                  pl.BlockSpec((1, _LANES), lambda i: (0, 0))],
        out_specs=pl.BlockSpec((1, _LANES), lambda i: (0, 0)),
    )(gmat, invc, mean_p, std_p)
    return out[0, :n_filters]


# ---------------------------------------------------------------------------
# SaliencyModel.forward (mode='std', aggregation='filter_wise', signed=False)
# ---------------------------------------------------------------------------
def saliency_forward(params, inputs, targets,
                     testset_mean_abs_grad=None, testset_std_abs_grad=None,
                     mode="std"):
    if mode not in ("naive", "std", "norm"):
        raise ValueError(mode)

    def loss_fn(p):
        return cross_entropy(net_forward(p, inputs), targets)

    # torch.autograd.grad(loss, net.parameters()) equivalent.
    grads = jax.grad(loss_fn)(params)

    # filter_wise aggregation: only 4-D (conv) gradients contribute.
    param_order = ("conv1_w", "conv1_b", "conv2_w", "conv2_b", "fc_w", "fc_b")
    conv_grads = [grads[n] for n in param_order if grads[n].ndim == 4]
    return saliency_epilogue(conv_grads, testset_mean_abs_grad,
                             testset_std_abs_grad, mode)


if __name__ == "__main__":
    key = jax.random.PRNGKey(0)
    ks = jax.random.split(key, 8)

    B, Cin, H, W = 2, 4, 16, 16
    C1, C2, NCLS = 8, 16, 10

    params = {
        "conv1_w": 0.1 * jax.random.normal(ks[0], (C1, Cin, 3, 3), jnp.float32),
        "conv1_b": jnp.zeros((C1,), jnp.float32),
        "conv2_w": 0.1 * jax.random.normal(ks[1], (C2, C1, 3, 3), jnp.float32),
        "conv2_b": jnp.zeros((C2,), jnp.float32),
        "fc_w": 0.1 * jax.random.normal(ks[2], (NCLS, C2), jnp.float32),
        "fc_b": jnp.zeros((NCLS,), jnp.float32),
    }

    x = jax.random.normal(ks[3], (B, Cin, H, W), jnp.float32)
    targets = jax.random.randint(ks[4], (B,), 0, NCLS)

    n_filters = C1 + C2  # one saliency entry per conv output filter
    testset_mean_abs_grad = jnp.abs(
        0.01 * jax.random.normal(ks[5], (n_filters,), jnp.float32))
    testset_std_abs_grad = jnp.abs(
        0.01 * jax.random.normal(ks[6], (n_filters,), jnp.float32))
    # exercise the "<= 1e-14 -> 1" clamp path
    testset_std_abs_grad = testset_std_abs_grad.at[0].set(0.0)

    fwd = jax.jit(lambda p, xi, t, m, s:
                  saliency_forward(p, xi, t, testset_mean_abs_grad=m,
                                   testset_std_abs_grad=s, mode="std"))
    sal = fwd(params, x, targets, testset_mean_abs_grad, testset_std_abs_grad)
    sal = jax.block_until_ready(sal)
    assert sal.shape == (n_filters,)
    assert bool(jnp.all(jnp.isfinite(sal)))
    print("KERNEL_OK")
</pallas_src>

<mosaic_0001>
module attributes {stable_mosaic.version = 11 : i64} {
  func.func @kernel(%arg0: i32, %arg1: i32, %arg2: memref<256x128xbf16, #tpu.memory_space<vmem>>, %arg3: memref<128x128xbf16, #tpu.memory_space<vmem>>, %arg4: memref<1x128xf32, #tpu.memory_space<vmem>>, %arg5: memref<256x128xbf16, #tpu.memory_space<vmem>>) attributes {dimension_semantics = [#tpu.dimension_semantics<parallel>, #tpu.dimension_semantics<parallel>], iteration_bounds = array<i64: 2, 1>, scalar_prefetch = 0 : i64, scratch_operands = 0 : i64, tpu.core_type = #tpu.core_type<tc>, window_params = [{transform_indices = @transform_0, window_bounds = array<i64: 256, 128>}, {transform_indices = @transform_1, window_bounds = array<i64: 128, 128>}, {transform_indices = @transform_2, window_bounds = array<i64: 1, 128>}, {transform_indices = @transform_3, window_bounds = array<i64: 256, 128>}]} {
    %c0 = arith.constant 0 : index
    %c0_0 = arith.constant 0 : index
    %0 = vector.load %arg2[%c0, %c0_0] : memref<256x128xbf16, #tpu.memory_space<vmem>>, vector<256x128xbf16>
    %c0_1 = arith.constant 0 : index
    %c0_2 = arith.constant 0 : index
    %1 = vector.load %arg3[%c0_1, %c0_2] : memref<128x128xbf16, #tpu.memory_space<vmem>>, vector<128x128xbf16>
    %cst = arith.constant dense<0.000000e+00> : vector<256x128xf32>
    %2 = tpu.matmul %0, %1, %cst {dimension_numbers = #tpu.dot_dimension_numbers<[1], [0], [0], [1], [0, 0, 1, 1], [], []>} : vector<256x128xbf16>, vector<128x128xbf16>, vector<256x128xf32> -> vector<256x128xf32>
    %c0_3 = arith.constant 0 : index
    %c0_4 = arith.constant 0 : index
    %3 = vector.load %arg4[%c0_3, %c0_4] : memref<1x128xf32, #tpu.memory_space<vmem>>, vector<1x128xf32>
    %4 = vector.broadcast %3 : vector<1x128xf32> to vector<256x128xf32>
    %5 = arith.addf %2, %4 : vector<256x128xf32>
    %cst_5 = arith.constant 0.000000e+00 : f32
    %6 = vector.broadcast %cst_5 : f32 to vector<256x128xf32>
    %7 = arith.maximumf %5, %6 : vector<256x128xf32>
    %8 = arith.truncf %7 : vector<256x128xf32> to vector<256x128xbf16>
    %c0_6 = arith.constant 0 : index
    %c0_7 = arith.constant 0 : index
    %9 = vector.load %arg5[%c0_6, %c0_7] : memref<256x128xbf16, #tpu.memory_space<vmem>>, vector<256x128xbf16>
    tpu.vector_store %arg5[%c0_6, %c0_7], %8 {strides = array<i32>} : memref<256x128xbf16, #tpu.memory_space<vmem>>, vector<256x128xbf16>,
    return
  }
  func.func @transform_0(%arg0: i32, %arg1: i32) -> (i32, i32) {
    %c0_i32 = arith.constant 0 : i32
    %c0_i32_0 = arith.constant 0 : i32
    return %arg0, %c0_i32 : i32, i32
  }
  func.func @transform_1(%arg0: i32, %arg1: i32) -> (i32, i32) {
    %c0_i32 = arith.constant 0 : i32
    %c0_i32_0 = arith.constant 0 : i32
    return %c0_i32, %arg1 : i32, i32
  }
  func.func @transform_2(%arg0: i32, %arg1: i32) -> (i32, i32) {
    %c0_i32 = arith.constant 0 : i32
    %c0_i32_0 = arith.constant 0 : i32
    return %c0_i32, %arg1 : i32, i32
  }
  func.func @transform_3(%arg0: i32, %arg1: i32) -> (i32, i32) {
    %c0_i32 = arith.constant 0 : i32
    return %arg0, %arg1 : i32, i32
  }
}

module attributes {stable_mosaic.version = 11 : i64} {
  func.func @kernel(%arg0: i32, %arg1: i32, %arg2: memref<128x128xbf16, #tpu.memory_space<vmem>>, %arg3: memref<128x128xbf16, #tpu.memory_space<vmem>>, %arg4: memref<1x128xf32, #tpu.memory_space<vmem>>, %arg5: memref<128x128xbf16, #tpu.memory_space<vmem>>) attributes {dimension_semantics = [#tpu.dimension_semantics<parallel>, #tpu.dimension_semantics<parallel>], iteration_bounds = array<i64: 3, 1>, scalar_prefetch = 0 : i64, scratch_operands = 0 : i64, tpu.core_type = #tpu.core_type<tc>, window_params = [{transform_indices = @transform_0, window_bounds = array<i64: 128, 128>}, {transform_indices = @transform_1, window_bounds = array<i64: 128, 128>}, {transform_indices = @transform_2, window_bounds = array<i64: 1, 128>}, {transform_indices = @transform_3, window_bounds = array<i64: 128, 128>}]} {
    %c0 = arith.constant 0 : index
    %c0_0 = arith.constant 0 : index
    %0 = vector.load %arg2[%c0, %c0_0] : memref<128x128xbf16, #tpu.memory_space<vmem>>, vector<128x128xbf16>
    %c0_1 = arith.constant 0 : index
    %c0_2 = arith.constant 0 : index
    %1 = vector.load %arg3[%c0_1, %c0_2] : memref<128x128xbf16, #tpu.memory_space<vmem>>, vector<128x128xbf16>
    %cst = arith.constant dense<0.000000e+00> : vector<128x128xf32>
    %2 = tpu.matmul %0, %1, %cst {dimension_numbers = #tpu.dot_dimension_numbers<[1], [0], [0], [1], [0, 0, 1, 1], [], []>} : vector<128x128xbf16>, vector<128x128xbf16>, vector<128x128xf32> -> vector<128x128xf32>
    %c0_3 = arith.constant 0 : index
    %c0_4 = arith.constant 0 : index
    %3 = vector.load %arg4[%c0_3, %c0_4] : memref<1x128xf32, #tpu.memory_space<vmem>>, vector<1x128xf32>
    %4 = vector.broadcast %3 : vector<1x128xf32> to vector<128x128xf32>
    %5 = arith.addf %2, %4 : vector<128x128xf32>
    %cst_5 = arith.constant 0.000000e+00 : f32
    %6 = vector.broadcast %cst_5 : f32 to vector<128x128xf32>
    %7 = arith.maximumf %5, %6 : vector<128x128xf32>
    %8 = arith.truncf %7 : vector<128x128xf32> to vector<128x128xbf16>
    %c0_6 = arith.constant 0 : index
    %c0_7 = arith.constant 0 : index
    %9 = vector.load %arg5[%c0_6, %c0_7] : memref<128x128xbf16, #tpu.memory_space<vmem>>, vector<128x128xbf16>
    tpu.vector_store %arg5[%c0_6, %c0_7], %8 {strides = array<i32>} : memref<128x128xbf16, #tpu.memory_space<vmem>>, vector<128x128xbf16>,
    return
  }
  func.func @transform_0(%arg0: i32, %arg1: i32) -> (i32, i32) {
    %c0_i32 = arith.constant 0 : i32
    %c0_i32_0 = arith.constant 0 : i32
    return %arg0, %c0_i32 : i32, i32
  }
  func.func @transform_1(%arg0: i32, %arg1: i32) -> (i32, i32) {
    %c0_i32 = arith.constant 0 : i32
    %c0_i32_0 = arith.constant 0 : i32
    return %c0_i32, %arg1 : i32, i32
  }
  func.func @transform_2(%arg0: i32, %arg1: i32) -> (i32, i32) {
    %c0_i32 = arith.constant 0 : i32
    %c0_i32_0 = arith.constant 0 : i32
    return %c0_i32, %arg1 : i32, i32
  }
  func.func @transform_3(%arg0: i32, %arg1: i32) -> (i32, i32) {
    %c0_i32 = arith.constant 0 : i32
    return %arg0, %arg1 : i32, i32
  }
}

module attributes {stable_mosaic.version = 11 : i64} {
  func.func @kernel(%arg0: i32, %arg1: i32, %arg2: memref<384x128xbf16, #tpu.memory_space<vmem>>, %arg3: memref<384x128xbf16, #tpu.memory_space<vmem>>, %arg4: memref<128x128xf32, #tpu.memory_space<vmem>>) attributes {dimension_semantics = [#tpu.dimension_semantics<parallel>, #tpu.dimension_semantics<parallel>], iteration_bounds = array<i64: 1, 1>, scalar_prefetch = 0 : i64, scratch_operands = 0 : i64, tpu.core_type = #tpu.core_type<tc>, window_params = [{transform_indices = @transform_0, window_bounds = array<i64: 384, 128>}, {transform_indices = @transform_1, window_bounds = array<i64: 384, 128>}, {transform_indices = @transform_2, window_bounds = array<i64: 128, 128>}]} {
    %c0 = arith.constant 0 : index
    %c0_0 = arith.constant 0 : index
    %0 = vector.load %arg2[%c0, %c0_0] : memref<384x128xbf16, #tpu.memory_space<vmem>>, vector<384x128xbf16>
    %c0_1 = arith.constant 0 : index
    %c0_2 = arith.constant 0 : index
    %1 = vector.load %arg3[%c0_1, %c0_2] : memref<384x128xbf16, #tpu.memory_space<vmem>>, vector<384x128xbf16>
    %cst = arith.constant dense<0.000000e+00> : vector<128x128xf32>
    %2 = tpu.matmul %0, %1, %cst {dimension_numbers = #tpu.dot_dimension_numbers<[0], [0], [1], [1], [0, 1, 1, 1], [], []>} : vector<384x128xbf16>, vector<384x128xbf16>, vector<128x128xf32> -> vector<128x128xf32>
    %c0_3 = arith.constant 0 : index
    %c0_4 = arith.constant 0 : index
    %3 = vector.load %arg4[%c0_3, %c0_4] : memref<128x128xf32, #tpu.memory_space<vmem>>, vector<128x128xf32>
    tpu.vector_store %arg4[%c0_3, %c0_4], %2 {strides = array<i32>} : memref<128x128xf32, #tpu.memory_space<vmem>>, vector<128x128xf32>,
    return
  }
  func.func @transform_0(%arg0: i32, %arg1: i32) -> (i32, i32) {
    %c0_i32 = arith.constant 0 : i32
    %c0_i32_0 = arith.constant 0 : i32
    return %c0_i32, %arg0 : i32, i32
  }
  func.func @transform_1(%arg0: i32, %arg1: i32) -> (i32, i32) {
    %c0_i32 = arith.constant 0 : i32
    %c0_i32_0 = arith.constant 0 : i32
    return %c0_i32, %arg1 : i32, i32
  }
  func.func @transform_2(%arg0: i32, %arg1: i32) -> (i32, i32) {
    %c0_i32 = arith.constant 0 : i32
    return %arg0, %arg1 : i32, i32
  }
}

module attributes {stable_mosaic.version = 11 : i64} {
  func.func @kernel(%arg0: i32, %arg1: i32, %arg2: memref<128x128xbf16, #tpu.memory_space<vmem>>, %arg3: memref<128x128xbf16, #tpu.memory_space<vmem>>, %arg4: memref<128x128xbf16, #tpu.memory_space<vmem>>) attributes {dimension_semantics = [#tpu.dimension_semantics<parallel>, #tpu.dimension_semantics<parallel>], iteration_bounds = array<i64: 3, 1>, scalar_prefetch = 0 : i64, scratch_operands = 0 : i64, tpu.core_type = #tpu.core_type<tc>, window_params = [{transform_indices = @transform_0, window_bounds = array<i64: 128, 128>}, {transform_indices = @transform_1, window_bounds = array<i64: 128, 128>}, {transform_indices = @transform_2, window_bounds = array<i64: 128, 128>}]} {
    %c0 = arith.constant 0 : index
    %c0_0 = arith.constant 0 : index
    %0 = vector.load %arg2[%c0, %c0_0] : memref<128x128xbf16, #tpu.memory_space<vmem>>, vector<128x128xbf16>
    %c0_1 = arith.constant 0 : index
    %c0_2 = arith.constant 0 : index
    %1 = vector.load %arg3[%c0_1, %c0_2] : memref<128x128xbf16, #tpu.memory_space<vmem>>, vector<128x128xbf16>
    %cst = arith.constant dense<0.000000e+00> : vector<128x128xf32>
    %2 = tpu.matmul %0, %1, %cst {dimension_numbers = #tpu.dot_dimension_numbers<[1], [1], [0], [0], [0, 0, 1, 0], [], []>} : vector<128x128xbf16>, vector<128x128xbf16>, vector<128x128xf32> -> vector<128x128xf32>
    %3 = arith.truncf %2 : vector<128x128xf32> to vector<128x128xbf16>
    %c0_3 = arith.constant 0 : index
    %c0_4 = arith.constant 0 : index
    %4 = vector.load %arg4[%c0_3, %c0_4] : memref<128x128xbf16, #tpu.memory_space<vmem>>, vector<128x128xbf16>
    tpu.vector_store %arg4[%c0_3, %c0_4], %3 {strides = array<i32>} : memref<128x128xbf16, #tpu.memory_space<vmem>>, vector<128x128xbf16>,
    return
  }
  func.func @transform_0(%arg0: i32, %arg1: i32) -> (i32, i32) {
    %c0_i32 = arith.constant 0 : i32
    %c0_i32_0 = arith.constant 0 : i32
    return %arg0, %c0_i32 : i32, i32
  }
  func.func @transform_1(%arg0: i32, %arg1: i32) -> (i32, i32) {
    %c0_i32 = arith.constant 0 : i32
    %c0_i32_0 = arith.constant 0 : i32
    return %arg1, %c0_i32 : i32, i32
  }
  func.func @transform_2(%arg0: i32, %arg1: i32) -> (i32, i32) {
    %c0_i32 = arith.constant 0 : i32
    return %arg0, %arg1 : i32, i32
  }
}

module attributes {stable_mosaic.version = 11 : i64} {
  func.func @kernel(%arg0: i32, %arg1: i32, %arg2: memref<512x128xbf16, #tpu.memory_space<vmem>>, %arg3: memref<512x128xbf16, #tpu.memory_space<vmem>>, %arg4: memref<128x128xf32, #tpu.memory_space<vmem>>) attributes {dimension_semantics = [#tpu.dimension_semantics<parallel>, #tpu.dimension_semantics<parallel>], iteration_bounds = array<i64: 1, 1>, scalar_prefetch = 0 : i64, scratch_operands = 0 : i64, tpu.core_type = #tpu.core_type<tc>, window_params = [{transform_indices = @transform_0, window_bounds = array<i64: 512, 128>}, {transform_indices = @transform_1, window_bounds = array<i64: 512, 128>}, {transform_indices = @transform_2, window_bounds = array<i64: 128, 128>}]} {
    %c0 = arith.constant 0 : index
    %c0_0 = arith.constant 0 : index
    %0 = vector.load %arg2[%c0, %c0_0] : memref<512x128xbf16, #tpu.memory_space<vmem>>, vector<512x128xbf16>
    %c0_1 = arith.constant 0 : index
    %c0_2 = arith.constant 0 : index
    %1 = vector.load %arg3[%c0_1, %c0_2] : memref<512x128xbf16, #tpu.memory_space<vmem>>, vector<512x128xbf16>
    %cst = arith.constant dense<0.000000e+00> : vector<128x128xf32>
    %2 = tpu.matmul %0, %1, %cst {dimension_numbers = #tpu.dot_dimension_numbers<[0], [0], [1], [1], [0, 1, 1, 1], [], []>} : vector<512x128xbf16>, vector<512x128xbf16>, vector<128x128xf32> -> vector<128x128xf32>
    %c0_3 = arith.constant 0 : index
    %c0_4 = arith.constant 0 : index
    %3 = vector.load %arg4[%c0_3, %c0_4] : memref<128x128xf32, #tpu.memory_space<vmem>>, vector<128x128xf32>
    tpu.vector_store %arg4[%c0_3, %c0_4], %2 {strides = array<i32>} : memref<128x128xf32, #tpu.memory_space<vmem>>, vector<128x128xf32>,
    return
  }
  func.func @transform_0(%arg0: i32, %arg1: i32) -> (i32, i32) {
    %c0_i32 = arith.constant 0 : i32
    %c0_i32_0 = arith.constant 0 : i32
    return %c0_i32, %arg0 : i32, i32
  }
  func.func @transform_1(%arg0: i32, %arg1: i32) -> (i32, i32) {
    %c0_i32 = arith.constant 0 : i32
    %c0_i32_0 = arith.constant 0 : i32
    return %c0_i32, %arg1 : i32, i32
  }
  func.func @transform_2(%arg0: i32, %arg1: i32) -> (i32, i32) {
    %c0_i32 = arith.constant 0 : i32
    return %arg0, %arg1 : i32, i32
  }
}

module attributes {stable_mosaic.version = 11 : i64} {
  func.func @kernel(%arg0: i32, %arg1: memref<72x128xf32, #tpu.memory_space<vmem>>, %arg2: memref<1x128xf32, #tpu.memory_space<vmem>>, %arg3: memref<1x128xf32, #tpu.memory_space<vmem>>, %arg4: memref<1x128xf32, #tpu.memory_space<vmem>>, %arg5: memref<1x128xf32, #tpu.memory_space<vmem>>) attributes {dimension_semantics = [#tpu.dimension_semantics<arbitrary>], iteration_bounds = array<i64: 1>, scalar_prefetch = 0 : i64, scratch_operands = 0 : i64, tpu.core_type = #tpu.core_type<tc>, window_params = [{pipeline_mode = #tpu.pipeline_mode<synchronous>, transform_indices = @transform_0, window_bounds = array<i64: 72, 128>}, {pipeline_mode = #tpu.pipeline_mode<synchronous>, transform_indices = @transform_1, window_bounds = array<i64: 1, 128>}, {pipeline_mode = #tpu.pipeline_mode<synchronous>, transform_indices = @transform_2, window_bounds = array<i64: 1, 128>}, {pipeline_mode = #tpu.pipeline_mode<synchronous>, transform_indices = @transform_3, window_bounds = array<i64: 1, 128>}, {pipeline_mode = #tpu.pipeline_mode<synchronous>, transform_indices = @transform_4, window_bounds = array<i64: 1, 128>}]} {
    %c0 = arith.constant 0 : index
    %c0_0 = arith.constant 0 : index
    %0 = vector.load %arg1[%c0, %c0_0] : memref<72x128xf32, #tpu.memory_space<vmem>>, vector<72x128xf32>
    %1 = math.absf %0 : vector<72x128xf32>
    %cst = arith.constant dense<0.000000e+00> : vector<128xf32>
    %2 = vector.multi_reduction <add>, %1, %cst [0] : vector<72x128xf32> to vector<128xf32>
    %3 = vector.shape_cast %2 : vector<128xf32> to vector<1x128xf32>
    %c0_1 = arith.constant 0 : index
    %c0_2 = arith.constant 0 : index
    %4 = vector.load %arg2[%c0_1, %c0_2] : memref<1x128xf32, #tpu.memory_space<vmem>>, vector<1x128xf32>
    %5 = arith.mulf %3, %4 : vector<1x128xf32>
    %c0_3 = arith.constant 0 : index
    %c0_4 = arith.constant 0 : index
    %6 = vector.load %arg4[%c0_3, %c0_4] : memref<1x128xf32, #tpu.memory_space<vmem>>, vector<1x128xf32>
    %cst_5 = arith.constant 9.99999982E-15 : f32
    %7 = vector.broadcast %cst_5 : f32 to vector<1x128xf32>
    %8 = arith.cmpf ole, %6, %7 : vector<1x128xf32>
    %c0_6 = arith.constant 0 : index
    %c0_7 = arith.constant 0 : index
    %9 = vector.load %arg4[%c0_6, %c0_7] : memref<1x128xf32, #tpu.memory_space<vmem>>, vector<1x128xf32>
    %cst_8 = arith.constant 1.000000e+00 : f32
    %10 = vector.broadcast %cst_8 : f32 to vector<1x128xf32>
    %11 = arith.select %8, %10, %9 : vector<1x128xi1>, vector<1x128xf32>
    %c0_9 = arith.constant 0 : index
    %c0_10 = arith.constant 0 : index
    %12 = vector.load %arg3[%c0_9, %c0_10] : memref<1x128xf32, #tpu.memory_space<vmem>>, vector<1x128xf32>
    %13 = arith.subf %5, %12 : vector<1x128xf32>
    %14 = arith.divf %13, %11 : vector<1x128xf32>
    %c0_11 = arith.constant 0 : index
    %c0_12 = arith.constant 0 : index
    %15 = vector.load %arg5[%c0_11, %c0_12] : memref<1x128xf32, #tpu.memory_space<vmem>>, vector<1x128xf32>
    tpu.vector_store %arg5[%c0_11, %c0_12], %14 {strides = array<i32>} : memref<1x128xf32, #tpu.memory_space<vmem>>, vector<1x128xf32>,
    return
  }
  func.func @transform_0(%arg0: i32) -> (i32, i32) {
    %c0_i32 = arith.constant 0 : i32
    %c0_i32_0 = arith.constant 0 : i32
    %c0_i32_1 = arith.constant 0 : i32
    return %c0_i32, %c0_i32_0 : i32, i32
  }
  func.func @transform_1(%arg0: i32) -> (i32, i32) {
    %c0_i32 = arith.constant 0 : i32
    %c0_i32_0 = arith.constant 0 : i32
    %c0_i32_1 = arith.constant 0 : i32
    return %c0_i32, %c0_i32_0 : i32, i32
  }
  func.func @transform_2(%arg0: i32) -> (i32, i32) {
    %c0_i32 = arith.constant 0 : i32
    %c0_i32_0 = arith.constant 0 : i32
    %c0_i32_1 = arith.constant 0 : i32
    return %c0_i32, %c0_i32_0 : i32, i32
  }
  func.func @transform_3(%arg0: i32) -> (i32, i32) {
    %c0_i32 = arith.constant 0 : i32
    %c0_i32_0 = arith.constant 0 : i32
    %c0_i32_1 = arith.constant 0 : i32
    return %c0_i32, %c0_i32_0 : i32, i32
  }
  func.func @transform_4(%arg0: i32) -> (i32, i32) {
    %c0_i32 = arith.constant 0 : i32
    %c0_i32_0 = arith.constant 0 : i32
    %c0_i32_1 = arith.constant 0 : i32
    return %c0_i32, %c0_i32_0 : i32, i32
  }
}

</mosaic_0001>

<bundles_post_ra>
// kernel: jvp__.2
= control target key start
LH: loop header
LB: loop body
LE: loop exit
PB: predicated region body
PF: predicated region fallthrough
CT: control target
= control target key end

     0   :  { %s1257_s12 = smov 0   ;;  %s1259_s13 = smov 0   ;;  %s1394_s0 = inlined_call_operand.vmem [shape: bf16[512,128], index: 0, kind: input, shape index: {}]   ;;  %s1395_s1 = inlined_call_operand.vmem [shape: bf16[128,128], index: 1, kind: input, shape index: {}]   ;;  %s1396_s2 = inlined_call_operand.vmem [shape: f32[1,128], index: 2, kind: input, shape index: {}]   ;;  %s1397_s3 = inlined_call_operand.vmem [shape: bf16[512,128], index: 3, kind: output, shape index: {}]  }
   0x1   :  { %s1261_s14 = smov 0  }
   0x2 LB: > { %s25_s15 = sadd.s32 1, %s1231_s13  ;;  %p886_p0 = scmp.ge.s32.totalorder %s1235_s14, 1  ;;  %s1235_s14 = sphi %s1261_s14, %s13_s14   ;;  %s1231_s13 = sphi %s1259_s13, %s1399_s13   ;;  %s1227_s12 = sphi %s1257_s12, %s1398_s12  }
   0x3   : > { %p27_p1 = scmp.ge.s32.totalorder %s25_s15, 2  ;;  %p169_p2 = scmp.lt.s32.totalorder %s1235_s14, 3 }
   0x5   : > { %s1401_s15 = smov (%p27_p1, %s25_s15), 0  ;;  %p170_p3 = pnand %p886_p0, %p169_p2 }
   0x6   : > { %v1189_v0 = vld [vmem:[%s1395_s1] sm:$0xff] (!%p170_p3)   ;;  %s887_s18 = sshll.u32 (!%p170_p3), %s1227_s12, 5  ;;  %v1190_v1 = vld [vmem:[%s1395_s1 + $0x8] sm:$0xff] (!%p170_p3)   ;;  %v1191_v2 = vld [vmem:[%s1395_s1 + $0x10] sm:$0xff] (!%p170_p3)  }
   0x7   : > { %173 = sbr.rel (%p170_p3) target bundleno = 285 (0x11d), region = 32  ;;  %p204_p4 = scmp.lt.s32.totalorder (!%p170_p3), %s887_s18, 63  ;;  %1101 = vmatprep.subr.bf16.mxu0 (!%p170_p3), %v1189_v0  ;;  %1149 = vmatprep.subr.bf16.mxu1 (!%p170_p3), %v1189_v0  ;;  %v1192_v3 = vld [vmem:[%s1395_s1 + $0x18] sm:$0xff] (!%p170_p3)   ;;  %v1193_v6 = vld [vmem:[%s1395_s1 + $0x20] sm:$0xff] (!%p170_p3)   ;;  %v1194_v7 = vld [vmem:[%s1395_s1 + $0x28] sm:$0xff] (!%p170_p3)  }
   0x8   : > { %1102 = vmatpush3.bf16.msra.mxu0 (!%p170_p3), %v1189_v0  ;;  %1157 = vmatpush3.bf16.msra.mxu1 (!%p170_p3), %v1189_v0  ;;  %v1195_v8 = vld [vmem:[%s1395_s1 + $0x30] sm:$0xff] (!%p170_p3)   ;;  %v1196_v9 = vld [vmem:[%s1395_s1 + $0x38] sm:$0xff] (!%p170_p3)   ;;  %v1328_v24 = vld [vmem:[%s1396_s2] ss:$0 sm:$0xff] (!%p170_p3) }
   0x9   : > { %1103 = vmatprep.subr.bf16.mxu0 (!%p170_p3), %v1190_v1  ;;  %1150 = vmatprep.subr.bf16.mxu1 (!%p170_p3), %v1190_v1 }
   0xc   : > { %1104 = vmatpush3.bf16.msra.mxu0 (!%p170_p3), %v1190_v1  ;;  %1158 = vmatpush3.bf16.msra.mxu1 (!%p170_p3), %v1190_v1 }
   0xd   : > { %1105 = vmatprep.subr.bf16.mxu0 (!%p170_p3), %v1191_v2  ;;  %1151 = vmatprep.subr.bf16.mxu1 (!%p170_p3), %v1191_v2 }
   0xe   : > { %s1403_s18 = smov (!%p204_p4, %s887_s18), 63 }
   0xf   : > { %s888_s23 = sshll.u32 %s1403_s18, 2 }
  0x10   : > { %s1292_s26 = scalar_lea.vmem %s1394_s0, %s888_s23  ;;  %1106 = vmatpush3.bf16.msra.mxu0 %v1191_v2  ;;  %1159 = vmatpush3.bf16.msra.mxu1 %v1191_v2  ;;  %s1343_s17 = scalar_lea.vmem %s1397_s3, %s888_s23 }
  0x11   : > { %v1197_v4 = vld [vmem:[%s1292_s26] sm:$0xff]   ;;  %1107 = vmatprep.subr.bf16.mxu0 %v1192_v3  ;;  %1152 = vmatprep.subr.bf16.mxu1 %v1192_v3  ;;  %v1199_v10 = vld [vmem:[%s1292_s26 + $0x8] sm:$0xff]   ;;  %v1201_v12 = vld [vmem:[%s1292_s26 + $0x10] sm:$0xff]  }
  0x12   : > { %v1198_v5 = vld [vmem:[%s1292_s26 + $0x40] sm:$0xff]   ;;  %1117 = vmatprep.mubr.bf16.mxu0 %v1197_v4  ;;  %v1200_v11 = vld [vmem:[%s1292_s26 + $0x48] sm:$0xff]   ;;  %v1202_v13 = vld [vmem:[%s1292_s26 + $0x50] sm:$0xff]  }
  0x13   : > { %1133 = vmatprep.mubr.bf16.mxu1 %v1198_v5  ;;  %v1203_v14 = vld [vmem:[%s1292_s26 + $0x18] sm:$0xff]   ;;  %v1205_v16 = vld [vmem:[%s1292_s26 + $0x20] sm:$0xff]   ;;  %v1207_v18 = vld [vmem:[%s1292_s26 + $0x28] sm:$0xff]  }
  0x14   : > { %1108 = vmatpush3.bf16.msra.mxu0 %v1192_v3  ;;  %1160 = vmatpush3.bf16.msra.mxu1 %v1192_v3  ;;  %v1204_v15 = vld [vmem:[%s1292_s26 + $0x58] sm:$0xff]   ;;  %v1206_v17 = vld [vmem:[%s1292_s26 + $0x60] sm:$0xff]   ;;  %v1208_v19 = vld [vmem:[%s1292_s26 + $0x68] sm:$0xff]  }
  0x15   : > { %1109 = vmatprep.subr.bf16.mxu0 %v1193_v6  ;;  %1153 = vmatprep.subr.bf16.mxu1 %v1193_v6  ;;  %v1209_v20 = vld [vmem:[%s1292_s26 + $0x30] sm:$0xff]   ;;  %v1211_v22 = vld [vmem:[%s1292_s26 + $0x38] sm:$0xff]  }
  0x16   : > { %v1210_v21 = vld [vmem:[%s1292_s26 + $0x70] sm:$0xff]   ;;  %v1212_v23 = vld [vmem:[%s1292_s26 + $0x78] sm:$0xff]  }
  0x18   : > { %1110 = vmatpush3.bf16.msra.mxu0 %v1193_v6  ;;  %1161 = vmatpush3.bf16.msra.mxu1 %v1193_v6 }
  0x19   : > { %1111 = vmatprep.subr.bf16.mxu0 %v1194_v7  ;;  %1154 = vmatprep.subr.bf16.mxu1 %v1194_v7 }
  0x1c   : > { %1112 = vmatpush3.bf16.msra.mxu0 %v1194_v7  ;;  %1162 = vmatpush3.bf16.msra.mxu1 %v1194_v7 }
  0x1d   : > { %1113 = vmatprep.subr.bf16.mxu0 %v1195_v8  ;;  %1155 = vmatprep.subr.bf16.mxu1 %v1195_v8 }
  0x20   : > { %1114 = vmatpush3.bf16.msra.mxu0 %v1195_v8  ;;  %1163 = vmatpush3.bf16.msra.mxu1 %v1195_v8 }
  0x21   : > { %1115 = vmatprep.subr.bf16.mxu0 %v1196_v9  ;;  %1156 = vmatprep.subr.bf16.mxu1 %v1196_v9 }
  0x24   : > { %1116 = vmatpush3.bf16.msra.mxu0 %v1196_v9  ;;  %1164 = vmatpush3.bf16.msra.mxu1 %v1196_v9 }
  0x27   : > { %1118 = vmatmul.mubr.bf16.vlgmr.msra.gmra.mrb[0].mxu0 %v1199_v10  ;;  %1134 = vmatmul.mubr.bf16.vlgmr.msra.gmra.mrb[0].mxu1 %v1200_v11 }
  0x28   : > { %1121 = vmatprep.mubr.bf16.mxu0 %v1201_v12  ;;  %1137 = vmatprep.mubr.bf16.mxu1 %v1202_v13 }
  0x2f   : > { %1122 = vmatmul.mubr.bf16.gmra.mrb[4].mxu0 %v1203_v14  ;;  %1138 = vmatmul.mubr.bf16.gmra.mrb[4].mxu1 %v1204_v15 }
  0x30   : > { %1125 = vmatprep.mubr.bf16.mxu0 %v1205_v16  ;;  %1141 = vmatprep.mubr.bf16.mxu1 %v1206_v17 }
  0x37   : > { %1126 = vmatmul.mubr.bf16.gmra.mrb[8].mxu0 %v1207_v18  ;;  %1142 = vmatmul.mubr.bf16.gmra.mrb[8].mxu1 %v1208_v19 }
  0x38   : > { %1129 = vmatprep.mubr.bf16.mxu0 %v1209_v20  ;;  %1145 = vmatprep.mubr.bf16.mxu1 %v1210_v21 }
  0x3f   : > { %1130 = vmatmul.mubr.bf16.gmra.mrb[12].mxu0 %v1211_v22  ;;  %1146 = vmatmul.mubr.bf16.gmra.mrb[12].mxu1 %v1212_v23 }
  0xfa   : > { %v1119_v25 = vpop.f32.mrb[0].mxu0  ;;  %v1135_v26 = vpop.f32.mrb[0].mxu1 }
  0xfb   : > { %v468_v27 = vadd.f32 %v1119_v25, %v1328_v24  ;;  %v532_v28 = vadd.f32 %v1135_v26, %v1328_v24  ;;  %v459_v29 = vpop.f32.mrb[1].mxu0  ;;  %v523_v30 = vpop.f32.mrb[1].mxu1 }
  0xfc   : > { %v460_v31 = vadd.f32 %v1328_v24, %v459_v29  ;;  %v524_v32 = vadd.f32 %v1328_v24, %v523_v30  ;;  %v1120_v33 = vpop.f32.mrb[2].mxu0  ;;  %v1136_v34 = vpop.f32.mrb[2].mxu1 }
  0xfd   : > { %v471_v35 = vadd.f32 %v1120_v33, %v1328_v24  ;;  %v535_v36 = vadd.f32 %v1136_v34, %v1328_v24  ;;  %v462_v37 = vpop.f32.mrb[3].mxu0  ;;  %v526_v38 = vpop.f32.mrb[3].mxu1  ;;  %v588_v41 = vmax.f32 %v468_v27, 0.0  ;;  %v604_v42 = vmax.f32 %v532_v28, 0.0 }
  0xfe   : > { %v463_v39 = vadd.f32 %v1328_v24, %v462_v37  ;;  %v527_v40 = vadd.f32 %v1328_v24, %v526_v38  ;;  %v586_v45 = vmax.f32 %v460_v31, 0.0  ;;  %v602_v46 = vmax.f32 %v524_v32, 0.0 }
  0xff   : > { %v589_v43 = vmax.f32 %v471_v35, 0.0  ;;  %v605_v44 = vmax.f32 %v535_v36, 0.0 }
 0x100   : > { %v587_v47 = vmax.f32 %v463_v39, 0.0  ;;  %v603_v48 = vmax.f32 %v527_v40, 0.0 }
 0x101   : > { %v990_v49 = vpack.c.bf16 %v589_v43, %v588_v41  ;;  %v1030_v50 = vpack.c.bf16 %v605_v44, %v604_v42 }
 0x102   : > { %v985_v51 = vpack.c.bf16 %v587_v47, %v586_v45  ;;  %v1025_v52 = vpack.c.bf16 %v603_v48, %v602_v46  ;;  %v1123_v53 = vpop.f32.mrb[4].mxu0  ;;  %v1139_v54 = vpop.f32.mrb[4].mxu1 }
 0x103   : > { %1062 = vst [vmem:[%s1343_s17 + $0x8] sm:$0xff] %v990_v49   ;;  %1070 = vst [vmem:[%s1343_s17 + $0x48] sm:$0xff] %v1030_v50   ;;  %v484_v55 = vadd.f32 %v1123_v53, %v1328_v24  ;;  %v548_v56 = vadd.f32 %v1139_v54, %v1328_v24  ;;  %v475_v57 = vpop.f32.mrb[5].mxu0  ;;  %v539_v58 = vpop.f32.mrb[5].mxu1 }
 0x104   : > { %986 = vst [vmem:[%s1343_s17] sm:$0xff] %v985_v51   ;;  %1069 = vst [vmem:[%s1343_s17 + $0x40] sm:$0xff] %v1025_v52   ;;  %v476_v59 = vadd.f32 %v1328_v24, %v475_v57  ;;  %v540_v60 = vadd.f32 %v1328_v24, %v539_v58  ;;  %v1124_v61 = vpop.f32.mrb[6].mxu0  ;;  %v1140_v62 = vpop.f32.mrb[6].mxu1 }
 0x105   : > { %v487_v63 = vadd.f32 %v1124_v61, %v1328_v24  ;;  %v551_v0 = vadd.f32 %v1140_v62, %v1328_v24  ;;  %v478_v1 = vpop.f32.mrb[7].mxu0  ;;  %v542_v2 = vpop.f32.mrb[7].mxu1  ;;  %v592_v5 = vmax.f32 %v484_v55, 0.0  ;;  %v608_v6 = vmax.f32 %v548_v56, 0.0 }
 0x106   : > { %v479_v3 = vadd.f32 %v1328_v24, %v478_v1  ;;  %v543_v4 = vadd.f32 %v1328_v24, %v542_v2  ;;  %v590_v9 = vmax.f32 %v476_v59, 0.0  ;;  %v606_v10 = vmax.f32 %v540_v60, 0.0 }
 0x107   : > { %v593_v7 = vmax.f32 %v487_v63, 0.0  ;;  %v609_v8 = vmax.f32 %v551_v0, 0.0 }
 0x108   : > { %v591_v11 = vmax.f32 %v479_v3, 0.0  ;;  %v607_v12 = vmax.f32 %v543_v4, 0.0 }
 0x109   : > { %v1000_v13 = vpack.c.bf16 %v593_v7, %v592_v5  ;;  %v1040_v14 = vpack.c.bf16 %v609_v8, %v608_v6 }
 0x10a   : > { %v995_v15 = vpack.c.bf16 %v591_v11, %v590_v9  ;;  %v1035_v16 = vpack.c.bf16 %v607_v12, %v606_v10  ;;  %v1127_v17 = vpop.f32.mrb[8].mxu0  ;;  %v1143_v18 = vpop.f32.mrb[8].mxu1 }
 0x10b   : > { %1064 = vst [vmem:[%s1343_s17 + $0x18] sm:$0xff] %v1000_v13   ;;  %1072 = vst [vmem:[%s1343_s17 + $0x58] sm:$0xff] %v1040_v14   ;;  %v500_v19 = vadd.f32 %v1127_v17, %v1328_v24  ;;  %v564_v20 = vadd.f32 %v1143_v18, %v1328_v24  ;;  %v491_v21 = vpop.f32.mrb[9].mxu0  ;;  %v555_v22 = vpop.f32.mrb[9].mxu1 }
 0x10c   : > { %1063 = vst [vmem:[%s1343_s17 + $0x10] sm:$0xff] %v995_v15   ;;  %1071 = vst [vmem:[%s1343_s17 + $0x50] sm:$0xff] %v1035_v16   ;;  %v492_v23 = vadd.f32 %v1328_v24, %v491_v21  ;;  %v556_v25 = vadd.f32 %v1328_v24, %v555_v22  ;;  %v1128_v26 = vpop.f32.mrb[10].mxu0  ;;  %v1144_v27 = vpop.f32.mrb[10].mxu1 }
 0x10d   : > { %v503_v28 = vadd.f32 %v1128_v26, %v1328_v24  ;;  %v567_v29 = vadd.f32 %v1144_v27, %v1328_v24  ;;  %v494_v30 = vpop.f32.mrb[11].mxu0  ;;  %v558_v31 = vpop.f32.mrb[11].mxu1  ;;  %v596_v34 = vmax.f32 %v500_v19, 0.0  ;;  %v612_v35 = vmax.f32 %v564_v20, 0.0 }
 0x10e   : > { %v495_v32 = vadd.f32 %v1328_v24, %v494_v30  ;;  %v559_v33 = vadd.f32 %v1328_v24, %v558_v31  ;;  %v594_v38 = vmax.f32 %v492_v23, 0.0  ;;  %v610_v39 = vmax.f32 %v556_v25, 0.0 }
 0x10f   : > { %v597_v36 = vmax.f32 %v503_v28, 0.0  ;;  %v613_v37 = vmax.f32 %v567_v29, 0.0 }
 0x110   : > { %v595_v40 = vmax.f32 %v495_v32, 0.0  ;;  %v611_v41 = vmax.f32 %v559_v33, 0.0 }
 0x111   : > { %v1010_v42 = vpack.c.bf16 %v597_v36, %v596_v34  ;;  %v1050_v43 = vpack.c.bf16 %v613_v37, %v612_v35 }
 0x112   : > { %v1005_v44 = vpack.c.bf16 %v595_v40, %v594_v38  ;;  %v1045_v45 = vpack.c.bf16 %v611_v41, %v610_v39  ;;  %v1131_v46 = vpop.f32.mrb[12].mxu0  ;;  %v1147_v47 = vpop.f32.mrb[12].mxu1 }
 0x113   : > { %1066 = vst [vmem:[%s1343_s17 + $0x28] sm:$0xff] %v1010_v42   ;;  %1074 = vst [vmem:[%s1343_s17 + $0x68] sm:$0xff] %v1050_v43   ;;  %v516_v48 = vadd.f32 %v1131_v46, %v1328_v24  ;;  %v580_v49 = vadd.f32 %v1147_v47, %v1328_v24  ;;  %v507_v50 = vpop.f32.mrb[13].mxu0  ;;  %v571_v51 = vpop.f32.mrb[13].mxu1 }
 0x114   : > { %1065 = vst [vmem:[%s1343_s17 + $0x20] sm:$0xff] %v1005_v44   ;;  %1073 = vst [vmem:[%s1343_s17 + $0x60] sm:$0xff] %v1045_v45   ;;  %v508_v52 = vadd.f32 %v1328_v24, %v507_v50  ;;  %v572_v53 = vadd.f32 %v1328_v24, %v571_v51  ;;  %v1132_v54 = vpop.f32.mrb[14].mxu0  ;;  %v1148_v55 = vpop.f32.mrb[14].mxu1 }
 0x115   : > { %v519_v56 = vadd.f32 %v1132_v54, %v1328_v24  ;;  %v583_v57 = vadd.f32 %v1148_v55, %v1328_v24  ;;  %v510_v58 = vpop.f32.mrb[15].mxu0  ;;  %v574_v59 = vpop.f32.mrb[15].mxu1  ;;  %v600_v62 = vmax.f32 %v516_v48, 0.0  ;;  %v616_v63 = vmax.f32 %v580_v49, 0.0 }
 0x116   : > { %v511_v60 = vadd.f32 %v1328_v24, %v510_v58  ;;  %v575_v61 = vadd.f32 %v1328_v24, %v574_v59  ;;  %v598_v2 = vmax.f32 %v508_v52, 0.0  ;;  %v614_v3 = vmax.f32 %v572_v53, 0.0 }
 0x117   : > { %v601_v0 = vmax.f32 %v519_v56, 0.0  ;;  %v617_v1 = vmax.f32 %v583_v57, 0.0 }
 0x118   : > { %v599_v4 = vmax.f32 %v511_v60, 0.0  ;;  %v615_v5 = vmax.f32 %v575_v61, 0.0 }
 0x119   : > { %v1020_v6 = vpack.c.bf16 %v601_v0, %v600_v62  ;;  %v1060_v7 = vpack.c.bf16 %v617_v1, %v616_v63 }
 0x11a   : > { %v1015_v8 = vpack.c.bf16 %v599_v4, %v598_v2  ;;  %v1055_v9 = vpack.c.bf16 %v615_v5, %v614_v3 }
 0x11b   : > { %1068 = vst [vmem:[%s1343_s17 + $0x38] sm:$0xff] %v1020_v6   ;;  %1076 = vst [vmem:[%s1343_s17 + $0x78] sm:$0xff] %v1060_v7  }
 0x11c   : > { %1067 = vst [vmem:[%s1343_s17 + $0x30] sm:$0xff] %v1015_v8   ;;  %1075 = vst [vmem:[%s1343_s17 + $0x70] sm:$0xff] %v1055_v9  }
 0x11d PF: > { %s13_s14 = sadd.s32 1, %s1235_s14   ;;  %s1398_s12 = smov %s1231_s13 }
 0x11e   : > { %p10_p5 = scmp.ge.s32.totalorder %s13_s14, 4   ;;  %s1399_s13 = smov %s1401_s15 }
 0x120   :  { %12 = sbr.rel (!%p10_p5) target bundleno = 2 (0x2), region = 68 }

// kernel: jvp__.3
= control target key start
LH: loop header
LB: loop body
LE: loop exit
PB: predicated region body
PF: predicated region fallthrough
CT: control target
= control target key end

     0   :  { %s913_s12 = smov 0   ;;  %s915_s13 = smov 0   ;;  %s1000_s0 = inlined_call_operand.vmem [shape: bf16[384,128], index: 0, kind: input, shape index: {}]   ;;  %s1001_s1 = inlined_call_operand.vmem [shape: bf16[128,128], index: 1, kind: input, shape index: {}]   ;;  %s1002_s2 = inlined_call_operand.vmem [shape: f32[1,128], index: 2, kind: input, shape index: {}]   ;;  %s1003_s3 = inlined_call_operand.vmem [shape: bf16[384,128], index: 3, kind: output, shape index: {}]  }
   0x1   :  { %s917_s14 = smov 0  }
   0x2 LB: > { %s25_s15 = sadd.s32 1, %s887_s13  ;;  %p662_p0 = scmp.ge.s32.totalorder %s891_s14, 1  ;;  %s891_s14 = sphi %s917_s14, %s13_s14   ;;  %s887_s13 = sphi %s915_s13, %s1005_s13   ;;  %s883_s12 = sphi %s913_s12, %s1004_s12  }
   0x3   : > { %p27_p1 = scmp.ge.s32.totalorder %s25_s15, 3  ;;  %p169_p2 = scmp.lt.s32.totalorder %s891_s14, 4 }
   0x5   : > { %s1007_s15 = smov (%p27_p1, %s25_s15), 0  ;;  %p170_p3 = pnand %p662_p0, %p169_p2 }
   0x6   : > { %v853_v0 = vld [vmem:[%s1001_s1] sm:$0xff] (!%p170_p3)   ;;  %s663_s18 = sshll.u32 (!%p170_p3), %s883_s12, 4  ;;  %v854_v1 = vld [vmem:[%s1001_s1 + $0x8] sm:$0xff] (!%p170_p3)   ;;  %v855_v2 = vld [vmem:[%s1001_s1 + $0x10] sm:$0xff] (!%p170_p3)  }
   0x7   : > { %173 = sbr.rel (%p170_p3) target bundleno = 269 (0x10d), region = 32  ;;  %p204_p4 = scmp.lt.s32.totalorder (!%p170_p3), %s663_s18, 47  ;;  %781 = vmatprep.subr.bf16.mxu0 (!%p170_p3), %v853_v0  ;;  %813 = vmatprep.subr.bf16.mxu1 (!%p170_p3), %v853_v0  ;;  %v856_v3 = vld [vmem:[%s1001_s1 + $0x18] sm:$0xff] (!%p170_p3)   ;;  %v857_v6 = vld [vmem:[%s1001_s1 + $0x20] sm:$0xff] (!%p170_p3)   ;;  %v858_v7 = vld [vmem:[%s1001_s1 + $0x28] sm:$0xff] (!%p170_p3)  }
   0x8   : > { %782 = vmatpush3.bf16.msra.mxu0 (!%p170_p3), %v853_v0  ;;  %821 = vmatpush3.bf16.msra.mxu1 (!%p170_p3), %v853_v0  ;;  %v859_v8 = vld [vmem:[%s1001_s1 + $0x30] sm:$0xff] (!%p170_p3)   ;;  %v860_v9 = vld [vmem:[%s1001_s1 + $0x38] sm:$0xff] (!%p170_p3)   ;;  %v667_v16 = vld [vmem:[%s1002_s2] ss:$0 sm:$0xff] (!%p170_p3) }
   0x9   : > { %783 = vmatprep.subr.bf16.mxu0 (!%p170_p3), %v854_v1  ;;  %814 = vmatprep.subr.bf16.mxu1 (!%p170_p3), %v854_v1 }
   0xc   : > { %784 = vmatpush3.bf16.msra.mxu0 (!%p170_p3), %v854_v1  ;;  %822 = vmatpush3.bf16.msra.mxu1 (!%p170_p3), %v854_v1 }
   0xd   : > { %785 = vmatprep.subr.bf16.mxu0 (!%p170_p3), %v855_v2  ;;  %815 = vmatprep.subr.bf16.mxu1 (!%p170_p3), %v855_v2 }
   0xe   : > { %s1009_s18 = smov (!%p204_p4, %s663_s18), 47 }
   0xf   : > { %s664_s23 = sshll.u32 %s1009_s18, 2 }
  0x10   : > { %s948_s26 = scalar_lea.vmem %s1000_s0, %s664_s23  ;;  %786 = vmatpush3.bf16.msra.mxu0 %v855_v2  ;;  %823 = vmatpush3.bf16.msra.mxu1 %v855_v2  ;;  %s981_s17 = scalar_lea.vmem %s1003_s3, %s664_s23 }
  0x11   : > { %v861_v4 = vld [vmem:[%s948_s26] sm:$0xff]   ;;  %787 = vmatprep.subr.bf16.mxu0 %v856_v3  ;;  %816 = vmatprep.subr.bf16.mxu1 %v856_v3  ;;  %v863_v10 = vld [vmem:[%s948_s26 + $0x8] sm:$0xff]   ;;  %v865_v12 = vld [vmem:[%s948_s26 + $0x10] sm:$0xff]  }
  0x12   : > { %v862_v5 = vld [vmem:[%s948_s26 + $0x20] sm:$0xff]   ;;  %797 = vmatprep.mubr.bf16.mxu0 %v861_v4  ;;  %v864_v11 = vld [vmem:[%s948_s26 + $0x28] sm:$0xff]   ;;  %v866_v13 = vld [vmem:[%s948_s26 + $0x30] sm:$0xff]  }
  0x13   : > { %805 = vmatprep.mubr.bf16.mxu1 %v862_v5  ;;  %v867_v14 = vld [vmem:[%s948_s26 + $0x18] sm:$0xff]  }
  0x14   : > { %788 = vmatpush3.bf16.msra.mxu0 %v856_v3  ;;  %824 = vmatpush3.bf16.msra.mxu1 %v856_v3  ;;  %v868_v15 = vld [vmem:[%s948_s26 + $0x38] sm:$0xff]  }
  0x15   : > { %789 = vmatprep.subr.bf16.mxu0 %v857_v6  ;;  %817 = vmatprep.subr.bf16.mxu1 %v857_v6 }
  0x18   : > { %790 = vmatpush3.bf16.msra.mxu0 %v857_v6  ;;  %825 = vmatpush3.bf16.msra.mxu1 %v857_v6 }
  0x19   : > { %791 = vmatprep.subr.bf16.mxu0 %v858_v7  ;;  %818 = vmatprep.subr.bf16.mxu1 %v858_v7 }
  0x1c   : > { %792 = vmatpush3.bf16.msra.mxu0 %v858_v7  ;;  %826 = vmatpush3.bf16.msra.mxu1 %v858_v7 }
  0x1d   : > { %793 = vmatprep.subr.bf16.mxu0 %v859_v8  ;;  %819 = vmatprep.subr.bf16.mxu1 %v859_v8 }
  0x20   : > { %794 = vmatpush3.bf16.msra.mxu0 %v859_v8  ;;  %827 = vmatpush3.bf16.msra.mxu1 %v859_v8 }
  0x21   : > { %795 = vmatprep.subr.bf16.mxu0 %v860_v9  ;;  %820 = vmatprep.subr.bf16.mxu1 %v860_v9 }
  0x24   : > { %796 = vmatpush3.bf16.msra.mxu0 %v860_v9  ;;  %828 = vmatpush3.bf16.msra.mxu1 %v860_v9 }
  0x27   : > { %798 = vmatmul.mubr.bf16.vlgmr.msra.gmra.mrb[0].mxu0 %v863_v10  ;;  %806 = vmatmul.mubr.bf16.vlgmr.msra.gmra.mrb[0].mxu1 %v864_v11 }
  0x28   : > { %801 = vmatprep.mubr.bf16.mxu0 %v865_v12  ;;  %809 = vmatprep.mubr.bf16.mxu1 %v866_v13 }
  0x2f   : > { %802 = vmatmul.mubr.bf16.gmra.mrb[4].mxu0 %v867_v14  ;;  %810 = vmatmul.mubr.bf16.gmra.mrb[4].mxu1 %v868_v15 }
  0xfa   : > { %v799_v17 = vpop.f32.mrb[0].mxu0  ;;  %v807_v18 = vpop.f32.mrb[0].mxu1 }
  0xfb   : > { %v404_v19 = vadd.f32 %v799_v17, %v667_v16  ;;  %v436_v20 = vadd.f32 %v807_v18, %v667_v16  ;;  %v395_v21 = vpop.f32.mrb[1].mxu0  ;;  %v427_v22 = vpop.f32.mrb[1].mxu1 }
  0xfc   : > { %v396_v23 = vadd.f32 %v667_v16, %v395_v21  ;;  %v428_v24 = vadd.f32 %v667_v16, %v427_v22  ;;  %v800_v25 = vpop.f32.mrb[2].mxu0  ;;  %v808_v26 = vpop.f32.mrb[2].mxu1 }
  0xfd   : > { %v407_v27 = vadd.f32 %v800_v25, %v667_v16  ;;  %v439_v28 = vadd.f32 %v808_v26, %v667_v16  ;;  %v398_v29 = vpop.f32.mrb[3].mxu0  ;;  %v430_v30 = vpop.f32.mrb[3].mxu1  ;;  %v460_v33 = vmax.f32 %v404_v19, 0.0  ;;  %v468_v34 = vmax.f32 %v436_v20, 0.0 }
  0xfe   : > { %v399_v31 = vadd.f32 %v667_v16, %v398_v29  ;;  %v431_v32 = vadd.f32 %v667_v16, %v430_v30  ;;  %v458_v37 = vmax.f32 %v396_v23, 0.0  ;;  %v466_v38 = vmax.f32 %v428_v24, 0.0 }
  0xff   : > { %v461_v35 = vmax.f32 %v407_v27, 0.0  ;;  %v469_v36 = vmax.f32 %v439_v28, 0.0 }
 0x100   : > { %v459_v39 = vmax.f32 %v399_v31, 0.0  ;;  %v467_v40 = vmax.f32 %v431_v32, 0.0 }
 0x101   : > { %v726_v41 = vpack.c.bf16 %v461_v35, %v460_v33  ;;  %v746_v42 = vpack.c.bf16 %v469_v36, %v468_v34 }
 0x102   : > { %v721_v43 = vpack.c.bf16 %v459_v39, %v458_v37  ;;  %v741_v44 = vpack.c.bf16 %v467_v40, %v466_v38  ;;  %v803_v45 = vpop.f32.mrb[4].mxu0  ;;  %v811_v46 = vpop.f32.mrb[4].mxu1 }
 0x103   : > { %758 = vst [vmem:[%s981_s17 + $0x8] sm:$0xff] %v726_v41   ;;  %762 = vst [vmem:[%s981_s17 + $0x28] sm:$0xff] %v746_v42   ;;  %v420_v47 = vadd.f32 %v803_v45, %v667_v16  ;;  %v452_v48 = vadd.f32 %v811_v46, %v667_v16  ;;  %v411_v49 = vpop.f32.mrb[5].mxu0  ;;  %v443_v50 = vpop.f32.mrb[5].mxu1 }
 0x104   : > { %722 = vst [vmem:[%s981_s17] sm:$0xff] %v721_v43   ;;  %761 = vst [vmem:[%s981_s17 + $0x20] sm:$0xff] %v741_v44   ;;  %v412_v51 = vadd.f32 %v667_v16, %v411_v49  ;;  %v444_v52 = vadd.f32 %v667_v16, %v443_v50  ;;  %v804_v53 = vpop.f32.mrb[6].mxu0  ;;  %v812_v54 = vpop.f32.mrb[6].mxu1 }
 0x105   : > { %v423_v55 = vadd.f32 %v804_v53, %v667_v16  ;;  %v455_v56 = vadd.f32 %v812_v54, %v667_v16  ;;  %v414_v57 = vpop.f32.mrb[7].mxu0  ;;  %v446_v58 = vpop.f32.mrb[7].mxu1  ;;  %v464_v61 = vmax.f32 %v420_v47, 0.0  ;;  %v472_v62 = vmax.f32 %v452_v48, 0.0 }
 0x106   : > { %v415_v59 = vadd.f32 %v667_v16, %v414_v57  ;;  %v447_v60 = vadd.f32 %v667_v16, %v446_v58  ;;  %v462_v1 = vmax.f32 %v412_v51, 0.0  ;;  %v470_v2 = vmax.f32 %v444_v52, 0.0 }
 0x107   : > { %v465_v63 = vmax.f32 %v423_v55, 0.0  ;;  %v473_v0 = vmax.f32 %v455_v56, 0.0 }
 0x108   : > { %v463_v3 = vmax.f32 %v415_v59, 0.0  ;;  %v471_v4 = vmax.f32 %v447_v60, 0.0 }
 0x109   : > { %v736_v5 = vpack.c.bf16 %v465_v63, %v464_v61  ;;  %v756_v6 = vpack.c.bf16 %v473_v0, %v472_v62 }
 0x10a   : > { %v731_v7 = vpack.c.bf16 %v463_v3, %v462_v1  ;;  %v751_v8 = vpack.c.bf16 %v471_v4, %v470_v2 }
 0x10b   : > { %760 = vst [vmem:[%s981_s17 + $0x18] sm:$0xff] %v736_v5   ;;  %764 = vst [vmem:[%s981_s17 + $0x38] sm:$0xff] %v756_v6  }
 0x10c   : > { %759 = vst [vmem:[%s981_s17 + $0x10] sm:$0xff] %v731_v7   ;;  %763 = vst [vmem:[%s981_s17 + $0x30] sm:$0xff] %v751_v8  }
 0x10d PF: > { %s13_s14 = sadd.s32 1, %s891_s14   ;;  %s1004_s12 = smov %s887_s13 }
 0x10e   : > { %p10_p5 = scmp.ge.s32.totalorder %s13_s14, 5   ;;  %s1005_s13 = smov %s1007_s15 }
 0x110   :  { %12 = sbr.rel (!%p10_p5) target bundleno = 2 (0x2), region = 68 }

// kernel: _lambda_.1
= control target key start
LH: loop header
LB: loop body
LE: loop exit
PB: predicated region body
PF: predicated region fallthrough
CT: control target
= control target key end

     0   :  { %s129_s0 = inlined_call_operand.vmem [shape: f32[72,128], index: 0, kind: input, shape index: {}]   ;;  %s130_s3 = inlined_call_operand.vmem [shape: f32[1,128], index: 3, kind: input, shape index: {}]   ;;  %s131_s1 = inlined_call_operand.vmem [shape: f32[1,128], index: 1, kind: input, shape index: {}]   ;;  %s132_s2 = inlined_call_operand.vmem [shape: f32[1,128], index: 2, kind: input, shape index: {}]   ;;  %s133_s4 = inlined_call_operand.vmem [shape: f32[1,128], index: 4, kind: output, shape index: {}]  }
   0x1   :  { %v17_v0 = vld [vmem:[%s129_s0] sm:$0xff]  ;;  %v18_v1 = vld [vmem:[%s129_s0 + $0x8] sm:$0xff]  ;;  %v19_v2 = vld [vmem:[%s129_s0 + $0x10] sm:$0xff] }
   0x2   :  { %v20_v3 = vld [vmem:[%s129_s0 + $0x18] sm:$0xff]  ;;  %v26_v4 = vand.u32 2147483647, %v17_v0  ;;  %v27_v5 = vand.u32 2147483647, %v18_v1  ;;  %v21_v6 = vld [vmem:[%s129_s0 + $0x20] sm:$0xff] }
   0x3   :  { %v28_v7 = vand.u32 2147483647, %v19_v2  ;;  %v29_v8 = vand.u32 2147483647, %v20_v3  ;;  %v22_v10 = vld [vmem:[%s129_s0 + $0x28] sm:$0xff]  ;;  %v23_v13 = vld [vmem:[%s129_s0 + $0x30] sm:$0xff] }
   0x4   :  { %v35_v9 = vadd.f32 %v27_v5, %v26_v4  ;;  %v30_v11 = vand.u32 2147483647, %v21_v6  ;;  %v31_v14 = vand.u32 2147483647, %v22_v10  ;;  %v24_v16 = vld [vmem:[%s129_s0 + $0x38] sm:$0xff]  ;;  %v25_v19 = vld [vmem:[%s129_s0 + $0x40] sm:$0xff] }
   0x5   :  { %v32_v17 = vand.u32 2147483647, %v23_v13  ;;  %v33_v20 = vand.u32 2147483647, %v24_v16  ;;  %v34_v22 = vand.u32 2147483647, %v25_v19 }
   0x6   :  { %v36_v12 = vadd.f32 %v35_v9, %v28_v7  ;;  %v51_v24 = vld [vmem:[%s130_s3] sm:$0x1] }
   0x7   :  { %vm52_vm0 = vcmp.le.f32.partialorder %v51_v24, 1e-14  ;;  %v49_v33 = vld [vmem:[%s131_s1] sm:$0x1] }
   0x8   :  { %v37_v15 = vadd.f32 %v36_v12, %v29_v8  ;;  %v53_v28 = vsel %vm52_vm0, 1.0, %v51_v24  ;;  %v54_v35 = vld [vmem:[%s132_s2] sm:$0x1] }
   0x9   :  { %63 = vrcp.f32 %v53_v28 }
   0xa   :  { %v38_v18 = vadd.f32 %v37_v15, %v30_v11 }
   0xc   :  { %v39_v21 = vadd.f32 %v38_v18, %v31_v14 }
   0xe   :  { %v40_v23 = vadd.f32 %v39_v21, %v32_v17 }
  0x10   :  { %v41_v25 = vadd.f32 %v40_v23, %v33_v20 }
  0x12   :  { %v42_v26 = vadd.f32 %v41_v25, %v34_v22 }
  0x13   :  { %v64_v37 = vpop.eup %63 }
  0x14   :  { %v43_v27 = vrot.slane %v42_v26, 4 }
  0x16   :  { %v44_v29 = vadd.f32 %v43_v27, %v42_v26 }
  0x18   :  { %v45_v30 = vrot.slane %v44_v29, 2 }
  0x1a   :  { %v46_v31 = vadd.f32 %v45_v30, %v44_v29 }
  0x1c   :  { %v47_v32 = vrot.slane %v46_v31, 1 }
  0x1e   :  { %v48_v34 = vadd.f32 %v47_v32, %v46_v31 }
  0x20   :  { %v50_v36 = vmul.f32 %v49_v33, %v48_v34 }
  0x22   :  { %v55_v38 = vsub.f32 %v50_v36, %v54_v35 }
  0x24   :  { %v57_v39 = vmul.f32 %v64_v37, %v55_v38 }
  0x26   :  { %58 = vst [vmem:[%s133_s4] sm:$0x1] %v57_v39 }

</bundles_post_ra>
